<compile_context>
chip_gen: v5e
topology: v5e:2x2
jax: 0.10.0
libtpu: 0.0.40
codegen_flags: <defaults>
</compile_context>

<pallas_src>
import functools

import jax
import jax.numpy as jnp
from jax.experimental import pallas as pl
from jax.experimental.pallas import tpu as pltpu


def mlp_kernel(x_ref, w1_ref, b1_ref, w2_ref, b2_ref, o_ref):
    # fc1: (TILE_B, D_in)bf16 @ (D_in, H)bf16 -> f32 accumulate on the MXU.
    h = jnp.dot(x_ref[...], w1_ref[...], preferred_element_type=jnp.float32)
    # Bias add + ReLU in f32 on the VPU.
    h = jnp.maximum(h + b1_ref[...], 0.0)
    # fc2: (TILE_B, H)bf16 @ (H, D_out)bf16 -> f32 accumulate on the MXU.
    out = jnp.dot(h.astype(jnp.bfloat16), w2_ref[...],
                  preferred_element_type=jnp.float32)
    o_ref[...] = out + b2_ref[...]


@functools.partial(jax.jit, static_argnames=("tile_b",))
def mlp_forward(x, w1, b1, w2, b2, *, tile_b=128):
    B, D_in = x.shape
    D_out = w2.shape[1]

    # Batch tile: multiple of 8 (sublane), capped at tile_b (128 fills the MXU
    # rows on v5e; v6e/v7x 256-row MXUs still pipeline fine at 128).
    tb = min(tile_b, 8 * pl.cdiv(B, 8))
    b_pad = tb * pl.cdiv(B, tb)
    if b_pad != B:
        x = jnp.pad(x, ((0, b_pad - B), (0, 0)))

    # bf16 MXU inputs; biases stay f32 (added post-accumulation).
    x_bf = x.astype(jnp.bfloat16)
    w1_bf = w1.astype(jnp.bfloat16)
    w2_bf = w2.astype(jnp.bfloat16)

    out = pl.pallas_call(
        mlp_kernel,
        out_shape=jax.ShapeDtypeStruct((b_pad, D_out), jnp.float32),
        grid_spec=pltpu.PrefetchScalarGridSpec(
            num_scalar_prefetch=0,
            grid=(b_pad // tb,),
            in_specs=[
                # Streamed per grid step (double-buffered).
                pl.BlockSpec((tb, D_in), lambda i: (i, 0)),
                # Weights / biases: same block every step -> resident in VMEM.
                pl.BlockSpec(w1_bf.shape, lambda i: (0, 0)),
                pl.BlockSpec(b1.shape, lambda i: (0, 0)),
                pl.BlockSpec(w2_bf.shape, lambda i: (0, 0)),
                pl.BlockSpec(b2.shape, lambda i: (0, 0)),
            ],
            out_specs=pl.BlockSpec((tb, D_out), lambda i: (i, 0)),
        ),
        compiler_params=pltpu.CompilerParams(
            # Batch tiles are independent -> shard across v7x's 2 TCs.
            dimension_semantics=("parallel",)
        ),
    )(x_bf, w1_bf, b1, w2_bf, b2)

    return out[:B]


def init_params(key, input_size, hidden, output_size):
    # Deterministic synthetic init (uniform, PyTorch-Linear-style bound), not a checkpoint.
    k1, k2, k3, k4 = jax.random.split(key, 4)
    bound1 = 1.0 / jnp.sqrt(input_size)
    bound2 = 1.0 / jnp.sqrt(hidden)
    # Stored as (in, out) == W.T relative to PyTorch's (out, in).
    w1 = jax.random.uniform(k1, (input_size, hidden), jnp.float32, -bound1, bound1)
    b1 = jax.random.uniform(k2, (1, hidden), jnp.float32, -bound1, bound1)
    w2 = jax.random.uniform(k3, (hidden, output_size), jnp.float32, -bound2, bound2)
    b2 = jax.random.uniform(k4, (1, output_size), jnp.float32, -bound2, bound2)
    return w1, b1, w2, b2


if __name__ == "__main__":
    input_size = 32
    hidden = 256
    output_size = 16
    batch = 8

    key = jax.random.PRNGKey(0)
    kx, kp = jax.random.split(key)
    x = jax.random.normal(kx, (batch, input_size), jnp.float32)
    w1, b1, w2, b2 = init_params(kp, input_size, hidden, output_size)

    out = mlp_forward(x, w1, b1, w2, b2)
    out = jax.block_until_ready(out)
    assert out.shape == (batch, output_size)

    # Reference 1: exact bf16-input / f32-accumulate math (matches kernel path).
    h_ref = jnp.maximum(
        jnp.dot(x.astype(jnp.bfloat16), w1.astype(jnp.bfloat16),
                preferred_element_type=jnp.float32) + b1, 0.0)
    ref_bf16 = jnp.dot(h_ref.astype(jnp.bfloat16), w2.astype(jnp.bfloat16),
                       preferred_element_type=jnp.float32) + b2
    assert jnp.allclose(out, ref_bf16, atol=1e-3, rtol=1e-3)

    # Reference 2: full f32 math (PyTorch semantics), loose tolerance for bf16 matmuls.
    ref_f32 = jnp.maximum(x @ w1 + b1, 0.0) @ w2 + b2
    assert jnp.allclose(out, ref_f32, atol=2e-2, rtol=2e-2)

    print("KERNEL_OK")
</pallas_src>

<mosaic_0001>
module attributes {stable_mosaic.version = 11 : i64} {
  func.func @mlp_kernel(%arg0: i32, %arg1: memref<8x32xbf16, #tpu.memory_space<vmem>>, %arg2: memref<32x256xbf16, #tpu.memory_space<vmem>>, %arg3: memref<1x256xf32, #tpu.memory_space<vmem>>, %arg4: memref<256x16xbf16, #tpu.memory_space<vmem>>, %arg5: memref<1x16xf32, #tpu.memory_space<vmem>>, %arg6: memref<8x16xf32, #tpu.memory_space<vmem>>) attributes {dimension_semantics = [#tpu.dimension_semantics<parallel>], iteration_bounds = array<i64: 1>, scalar_prefetch = 0 : i64, scratch_operands = 0 : i64, tpu.core_type = #tpu.core_type<tc>, window_params = [{transform_indices = @transform_0, window_bounds = array<i64: 8, 32>}, {pipeline_mode = #tpu.pipeline_mode<synchronous>, transform_indices = @transform_1, window_bounds = array<i64: 32, 256>}, {pipeline_mode = #tpu.pipeline_mode<synchronous>, transform_indices = @transform_2, window_bounds = array<i64: 1, 256>}, {pipeline_mode = #tpu.pipeline_mode<synchronous>, transform_indices = @transform_3, window_bounds = array<i64: 256, 16>}, {pipeline_mode = #tpu.pipeline_mode<synchronous>, transform_indices = @transform_4, window_bounds = array<i64: 1, 16>}, {transform_indices = @transform_5, window_bounds = array<i64: 8, 16>}]} {
    %c0 = arith.constant 0 : index
    %c0_0 = arith.constant 0 : index
    %0 = vector.load %arg1[%c0, %c0_0] : memref<8x32xbf16, #tpu.memory_space<vmem>>, vector<8x32xbf16>
    %c0_1 = arith.constant 0 : index
    %c0_2 = arith.constant 0 : index
    %1 = vector.load %arg2[%c0_1, %c0_2] : memref<32x256xbf16, #tpu.memory_space<vmem>>, vector<32x256xbf16>
    %cst = arith.constant dense<0.000000e+00> : vector<8x256xf32>
    %2 = tpu.matmul %0, %1, %cst {dimension_numbers = #tpu.dot_dimension_numbers<[1], [0], [0], [1], [0, 0, 1, 1], [], []>} : vector<8x32xbf16>, vector<32x256xbf16>, vector<8x256xf32> -> vector<8x256xf32>
    %c0_3 = arith.constant 0 : index
    %c0_4 = arith.constant 0 : index
    %3 = vector.load %arg3[%c0_3, %c0_4] : memref<1x256xf32, #tpu.memory_space<vmem>>, vector<1x256xf32>
    %4 = vector.broadcast %3 : vector<1x256xf32> to vector<8x256xf32>
    %5 = arith.addf %2, %4 : vector<8x256xf32>
    %cst_5 = arith.constant 0.000000e+00 : f32
    %6 = vector.broadcast %cst_5 : f32 to vector<8x256xf32>
    %7 = arith.maximumf %5, %6 : vector<8x256xf32>
    %8 = arith.truncf %7 : vector<8x256xf32> to vector<8x256xbf16>
    %c0_6 = arith.constant 0 : index
    %c0_7 = arith.constant 0 : index
    %9 = vector.load %arg4[%c0_6, %c0_7] : memref<256x16xbf16, #tpu.memory_space<vmem>>, vector<256x16xbf16>
    %cst_8 = arith.constant dense<0.000000e+00> : vector<8x16xf32>
    %10 = tpu.matmul %8, %9, %cst_8 {dimension_numbers = #tpu.dot_dimension_numbers<[1], [0], [0], [1], [0, 0, 1, 1], [], []>} : vector<8x256xbf16>, vector<256x16xbf16>, vector<8x16xf32> -> vector<8x16xf32>
    %c0_9 = arith.constant 0 : index
    %c0_10 = arith.constant 0 : index
    %11 = vector.load %arg5[%c0_9, %c0_10] : memref<1x16xf32, #tpu.memory_space<vmem>>, vector<1x16xf32>
    %12 = vector.broadcast %11 : vector<1x16xf32> to vector<8x16xf32>
    %13 = arith.addf %10, %12 : vector<8x16xf32>
    %c0_11 = arith.constant 0 : index
    %c0_12 = arith.constant 0 : index
    %14 = vector.load %arg6[%c0_11, %c0_12] : memref<8x16xf32, #tpu.memory_space<vmem>>, vector<8x16xf32>
    tpu.vector_store %arg6[%c0_11, %c0_12], %13 {strides = array<i32>} : memref<8x16xf32, #tpu.memory_space<vmem>>, vector<8x16xf32>,
    return
  }
  func.func @transform_0(%arg0: i32) -> (i32, i32) {
    %c0_i32 = arith.constant 0 : i32
    %c0_i32_0 = arith.constant 0 : i32
    return %arg0, %c0_i32 : i32, i32
  }
  func.func @transform_1(%arg0: i32) -> (i32, i32) {
    %c0_i32 = arith.constant 0 : i32
    %c0_i32_0 = arith.constant 0 : i32
    %c0_i32_1 = arith.constant 0 : i32
    return %c0_i32, %c0_i32_0 : i32, i32
  }
  func.func @transform_2(%arg0: i32) -> (i32, i32) {
    %c0_i32 = arith.constant 0 : i32
    %c0_i32_0 = arith.constant 0 : i32
    %c0_i32_1 = arith.constant 0 : i32
    return %c0_i32, %c0_i32_0 : i32, i32
  }
  func.func @transform_3(%arg0: i32) -> (i32, i32) {
    %c0_i32 = arith.constant 0 : i32
    %c0_i32_0 = arith.constant 0 : i32
    %c0_i32_1 = arith.constant 0 : i32
    return %c0_i32, %c0_i32_0 : i32, i32
  }
  func.func @transform_4(%arg0: i32) -> (i32, i32) {
    %c0_i32 = arith.constant 0 : i32
    %c0_i32_0 = arith.constant 0 : i32
    %c0_i32_1 = arith.constant 0 : i32
    return %c0_i32, %c0_i32_0 : i32, i32
  }
  func.func @transform_5(%arg0: i32) -> (i32, i32) {
    %c0_i32 = arith.constant 0 : i32
    %c0_i32_0 = arith.constant 0 : i32
    return %arg0, %c0_i32 : i32, i32
  }
}

</mosaic_0001>

<bundles_post_ra>
// kernel: mlp_forward.1
= control target key start
LH: loop header
LB: loop body
LE: loop exit
PB: predicated region body
PF: predicated region fallthrough
CT: control target
= control target key end

     0   :  { %vm53_vm0 = vcmask 261120   ;;  %s508_s0 = inlined_call_operand.vmem [shape: bf16[8,32], index: 0, kind: input, shape index: {}]   ;;  %s509_s1 = inlined_call_operand.vmem [shape: bf16[32,256], index: 1, kind: input, shape index: {}]   ;;  %s510_s2 = inlined_call_operand.vmem [shape: f32[1,256], index: 2, kind: input, shape index: {}]   ;;  %s511_s3 = inlined_call_operand.vmem [shape: bf16[256,16], index: 3, kind: input, shape index: {}]   ;;  %s512_s4 = inlined_call_operand.vmem [shape: f32[1,16], index: 4, kind: input, shape index: {}]   ;;  %s513_s5 = inlined_call_operand.hbm [shape: f32[8,16], index: 5, kind: output, shape index: {}]  }
   0x1   :  { %v273_v0 = vld [vmem:[%s509_s1 + $0x10] sm:$0xf]  ;;  %v348_v1 = vld [vmem:[%s509_s1 + $0x14] sm:$0xf0]  ;;  %v347_v2 = vld [vmem:[%s509_s1 + $0x14] sm:$0xf] }
   0x2   :  { %v274_v3 = vor.u32 %v348_v1, %v273_v0  ;;  %v275_v4 = vld [vmem:[%s509_s1 + $0x18] sm:$0xf0]  ;;  %v265_v5 = vld [vmem:[%s509_s1] sm:$0xf]  ;;  %v346_v6 = vld [vmem:[%s509_s1 + $0x4] sm:$0xf0] }
   0x3   :  { %v278_v7 = vor.u32 %v347_v2, %v275_v4  ;;  %v345_v8 = vld [vmem:[%s509_s1 + $0x4] sm:$0xf]  ;;  %v267_v9 = vld [vmem:[%s509_s1 + $0x8] sm:$0xf0]  ;;  %v266_v10 = vor.u32 %v346_v6, %v265_v5  ;;  %v356_v11 = vld [vmem:[%s511_s3 + $0x38] sm:$0xff] }
   0x4   :  { %63 = vmatpush.bf16.msra.mxu0 %v274_v3  ;;  %v364_v12 = vld [vmem:[%s511_s3 + $0x78] sm:$0xff]  ;;  %v270_v13 = vor.u32 %v345_v8, %v267_v9  ;;  %219 = vmatpush.bf16.msra.mxu2 %v356_v11  ;;  %v355_v14 = vld [vmem:[%s511_s3 + $0x30] sm:$0xff]  ;;  %v22_v16 = vld [vmem:[%s508_s0] sm:$0xf] }
   0x5   :  { %76 = vmatpush.bf16.msra.mxu1 %v278_v7  ;;  %232 = vmatpush.bf16.msra.mxu3 %v364_v12  ;;  %v363_v15 = vld [vmem:[%s511_s3 + $0x70] sm:$0xff] }
   0x8   :  { %64 = vmatpush.bf16.msra.mxu0 %v266_v10 }
   0x9   :  { %10 = vsyncpa [#allocation3], 0  ;;  %77 = vmatpush.bf16.msra.mxu1 %v270_v13  ;;  %220 = vmatpush.bf16.msra.mxu2 %v355_v14  ;;  %v354_v17 = vld [vmem:[%s511_s3 + $0x28] sm:$0xff]  ;;  %v353_v19 = vld [vmem:[%s511_s3 + $0x20] sm:$0xff]  ;;  %s254_s21 = sshll.u32 %s513_s5, 4  ;;  %vm245_vm1 = vcmask 130048   ;;  %s255_s21 = int_to_ptr.hbm [resolvable:$true] %s254_s21 }
   0xa   :  { %233 = vmatpush.bf16.msra.mxu3 %v363_v15  ;;  %v362_v18 = vld [vmem:[%s511_s3 + $0x68] sm:$0xff]  ;;  %v361_v20 = vld [vmem:[%s511_s3 + $0x60] sm:$0xff]  ;;  %v352_v21 = vld [vmem:[%s511_s3 + $0x18] sm:$0xff] }
   0xb   :  { %279 = vmatmul.msk.bf16.vlgmr.msra.gmra.mxu0 %vm53_vm0, %v22_v16  ;;  %v360_v22 = vld [vmem:[%s511_s3 + $0x58] sm:$0xff]  ;;  %v351_v23 = vld [vmem:[%s511_s3 + $0x10] sm:$0xff]  ;;  %v350_v25 = vld [vmem:[%s511_s3 + $0x8] sm:$0xff] }
   0xc   :  { %280 = vmatmul.msk.bf16.vlgmr.msra.gmra.mxu1 %vm53_vm0, %v22_v16  ;;  %v359_v24 = vld [vmem:[%s511_s3 + $0x50] sm:$0xff]  ;;  %v358_v26 = vld [vmem:[%s511_s3 + $0x48] sm:$0xff]  ;;  %v349_v27 = vld [vmem:[%s511_s3] sm:$0xff] }
   0xd   :  { %221 = vmatpush.bf16.msra.mxu2 %v354_v17  ;;  %v357_v28 = vld [vmem:[%s511_s3 + $0x40] sm:$0xff] }
   0xe   :  { %234 = vmatpush.bf16.msra.mxu3 %v362_v18  ;;  %v27_v29 = vld [vmem:[%s510_s2] sm:$0x3]  ;;  %s393_s2 = smov [#allocation2]  }
   0xf   :  { %v29_v30 = vperm.slane %v27_v29, 0  ;;  %v30_v31 = vperm.slane %v27_v29, 1  ;;  %v366_v42 = vld [vmem:[%s512_s4] ss:$0 sm:$0xff]  ;;  %s252_s18 = sshll.u32 %s393_s2, 4  ;;  %s253_s18 = int_to_ptr.vmem [resolvable:$true] %s252_s18 }
  0x11   :  { %222 = vmatpush.bf16.msra.mxu2 %v353_v19 }
  0x12   :  { %235 = vmatpush.bf16.msra.mxu3 %v361_v20 }
  0x15   :  { %223 = vmatpush.bf16.msra.mxu2 %v352_v21 }
  0x16   :  { %236 = vmatpush.bf16.msra.mxu3 %v360_v22 }
  0x19   :  { %224 = vmatpush.bf16.msra.mxu2 %v351_v23 }
  0x1a   :  { %237 = vmatpush.bf16.msra.mxu3 %v359_v24 }
  0x1d   :  { %225 = vmatpush.bf16.msra.mxu2 %v350_v25 }
  0x1e   :  { %238 = vmatpush.bf16.msra.mxu3 %v358_v26 }
  0x21   :  { %226 = vmatpush.bf16.msra.mxu2 %v349_v27 }
  0x22   :  { %239 = vmatpush.bf16.msra.mxu3 %v357_v28 }
  0x88   :  { %v66_v32 = vpop.f32.mrf.mxu0 }
  0x89   :  { %v67_v33 = vadd.f32 %v66_v32, %v29_v30  ;;  %v79_v34 = vpop.f32.mrf.mxu1 }
  0x8a   :  { %v80_v35 = vadd.f32 %v79_v34, %v30_v31 }
  0x8b   :  { %v83_v36 = vmax.f32 %v67_v33, 0.0 }
  0x8c   :  { %v84_v37 = vmax.f32 %v80_v35, 0.0 }
  0x8d   :  { %v85_v38 = vpack.c.bf16 %v83_v36, %v83_v36 }
  0x8e   :  { %v86_v39 = vpack.c.bf16 %v84_v37, %v84_v37 }
  0x8f   :  { %227 = vmatmul.bf16.vlgmr.msra.gmra.mxu2 %v85_v38 }
  0x90   :  { %240 = vmatmul.bf16.vlgmr.msra.gmra.mxu3 %v86_v39  ;;  %v68_v40 = vpop.f32.mrf.mxu0 }
  0x91   :  { %v81_v41 = vpop.f32.mrf.mxu1 }
 0x112   :  { %v228_v43 = vpop.f32.mrf.mxu2 }
 0x113   :  { %v229_v44 = vadd.f32 %v366_v42, %v228_v43  ;;  %v241_v45 = vpop.f32.mrf.mxu3 }
 0x115   :  { %v242_v46 = vadd.f32 %v241_v45, %v229_v44 }
 0x117   :  { %246 = vst.msk [vmem:[#allocation2] sm:$0xff] %vm245_vm1, %v242_v46 }
 0x118   :  { %257 = dma.vmem_to_hbm [thread:$0]  %s253_s18, 128, %s255_s21, [#allocation3]  }
 0x11a   :  { %v230_v47 = vpop.f32.mrf.mxu2 }
 0x11b   :  { %v243_v48 = vpop.f32.mrf.mxu3 }
 0x11c   :  { %391 = dma.done.wait [#allocation3], 128  }
 0x11d   :  { %392 = vsyncadd [#allocation3], 4294967168 }
 0x11e   :  { %262 = vsyncpa [#allocation3], 1 }

</bundles_post_ra>
